<compile_context>
chip_gen: v7x
topology: tpu7x:2x2x1
jax: 0.10.0
libtpu: 0.0.40
codegen_flags: <defaults>
</compile_context>

<pallas_src>
import functools

import jax
import jax.numpy as jnp
from jax.experimental import pallas as pl
from jax.experimental.pallas import tpu as pltpu


def _pair(v):
    return (v, v) if isinstance(v, int) else tuple(v)


def _quadruple(v):
    return (v, v, v, v) if isinstance(v, int) else tuple(v)


# -----------------------------------------------------------------------------
# Median-selection helpers.
# -----------------------------------------------------------------------------

def _med3(a, b, c):
    """Median of three values (4 VPU min/max ops)."""
    return jnp.minimum(jnp.maximum(a, jnp.minimum(b, c)), jnp.maximum(b, c))


def _lane_shift(v, dx):
    """Full-width lane shift: y[..., L] = v[..., L + dx] (tail lanes wrap).

    The wrapped / cross-segment lanes only land in output columns that the
    wrapper crops, so correctness is unaffected.  Explicit two-slice concat
    (== jnp.roll(v, -dx)) keeps the shift direction unambiguous and lowers to
    lane-rotate style data movement that rides off the saturated VALU slot.
    """
    if dx == 0:
        return v
    return jnp.concatenate([v[..., dx:], v[..., :dx]], axis=-1)


# Classic 19-CE median-of-9 network (Smith / Paeth). Only used for degenerate
# 1x9 / 9x1 kernels; the 3x3 case has a dedicated shared-column-sort kernel.
_MED9_PAIRS = [
    (1, 2), (4, 5), (7, 8), (0, 1), (3, 4), (6, 7),
    (1, 2), (4, 5), (7, 8),
    (0, 3), (5, 8), (4, 7),
    (3, 6), (1, 4), (2, 5),
    (4, 7), (4, 2), (6, 4), (4, 2),
]
_MED9_OUT = 4


def _selection_pairs(n):
    """Partial selection network placing the lower median at slot (n-1)//2."""
    # TODO(synk): replace with a forgetful-selection / Batcher partial network
    # for k >= 5 (O(n^2) CEs here is VALU-heavy).
    m = (n - 1) // 2
    pairs = [(i, j) for i in range(m + 1) for j in range(i + 1, n)]
    return pairs, m


def _apply_median_network(vals):
    """Lower median of `vals` (list of equal-shaped arrays) via a CE network."""
    n = len(vals)
    if n == 1:
        return vals[0]
    if n == 9:
        pairs, out_idx = _MED9_PAIRS, _MED9_OUT
    else:
        pairs, out_idx = _selection_pairs(n)

    # Dead-value elimination: keep only min/max writes that reach vals[out_idx].
    live = [False] * n
    live[out_idx] = True
    needs = []
    for a, b in reversed(pairs):
        need_lo, need_hi = live[a], live[b]
        needs.append((need_lo, need_hi))
        used = need_lo or need_hi
        live[a] = used
        live[b] = used
    needs.reverse()

    vals = list(vals)
    for (a, b), (need_lo, need_hi) in zip(pairs, needs):
        va, vb = vals[a], vals[b]
        if need_lo:
            vals[a] = jnp.minimum(va, vb)
        if need_hi:
            vals[b] = jnp.maximum(va, vb)
    return vals[out_idx]


# -----------------------------------------------------------------------------
# Pallas kernels.
# -----------------------------------------------------------------------------

def _median3x3_kernel(xp_ref, out_ref):
    """Shared-column-sort median-of-9.

    xp_ref : (Bt, Hp, Gwp) lane-packed planes, Gwp a multiple of 128.
    out_ref: (Bt, Ho, Gwp), Ho = Hp - 2.  Full-width (unmasked) store; garbage
    columns (windows straddling packed segments / pad lanes) are cropped by
    the wrapper.
    """
    ho = out_ref.shape[1]
    r0 = xp_ref[:, 0:ho, :]
    r1 = xp_ref[:, 1:ho + 1, :]
    r2 = xp_ref[:, 2:ho + 2, :]

    # Vertical column sort (3 CEs = 6 VPU ops), computed once per output
    # column and shared by the 3 horizontal window positions that reuse it.
    t0 = jnp.minimum(r0, r1)
    t1 = jnp.maximum(r0, r1)
    hi = jnp.maximum(t1, r2)
    t2 = jnp.minimum(t1, r2)
    lo = jnp.minimum(t0, t2)
    md = jnp.maximum(t0, t2)

    lo1, lo2 = _lane_shift(lo, 1), _lane_shift(lo, 2)
    md1, md2 = _lane_shift(md, 1), _lane_shift(md, 2)
    hi1, hi2 = _lane_shift(hi, 1), _lane_shift(hi, 2)

    # median9 = med3(max of column mins, med3 of column medians, min of column maxes)
    a = jnp.maximum(jnp.maximum(lo, lo1), lo2)
    b = _med3(md, md1, md2)
    c = jnp.minimum(jnp.minimum(hi, hi1), hi2)
    out_ref[...] = _med3(a, b, c)


def _median_pool_kernel(xp_ref, out_ref, *, kh, kw):
    """General k: kh row slices + kw full-width lane shifts -> pruned selection
    network placing the lower median.  Full-width store (no zero-fill)."""
    ho = out_ref.shape[1]
    vals = []
    for dy in range(kh):
        row = xp_ref[:, dy:dy + ho, :]
        for dx in range(kw):
            vals.append(_lane_shift(row, dx))
    out_ref[...] = _apply_median_network(vals)


# -----------------------------------------------------------------------------
# Wrapper (padding, lane packing, pallas_call, unpack).
# -----------------------------------------------------------------------------

def median_pool2d(x, kernel_size=3, stride=1, padding=0, same=False):
    """JAX/Pallas equivalent of MedianPool2d.forward.  x: (N, C, H, W)."""
    kh, kw = _pair(kernel_size)
    sh, sw = _pair(stride)
    n, c, h, w = x.shape

    # --- padding computation (identical logic to the PyTorch module) ---
    if same:
        ph = max(kh - sh, 0) if h % sh == 0 else max(kh - h % sh, 0)
        pw = max(kw - sw, 0) if w % sw == 0 else max(kw - w % sw, 0)
        p_l, p_r, p_t, p_b = pw // 2, pw - pw // 2, ph // 2, ph - ph // 2
    else:
        p_l, p_r, p_t, p_b = _quadruple(padding)

    # TODO(synk): fuse the reflect padding into the kernel (halo synthesis on
    # the unpadded block) to drop one extra full-tensor HBM pass.
    xp = jnp.pad(x, ((0, 0), (0, 0), (p_t, p_b), (p_l, p_r)), mode="reflect")

    b = n * c
    hp, wp = xp.shape[2], xp.shape[3]
    ho1 = hp - kh + 1
    wo1 = wp - kw + 1
    if ho1 < 1 or wo1 < 1:
        raise ValueError("kernel larger than padded input")

    xp_flat = xp.reshape(b, hp, wp)

    # --- lane packing: G planes side by side, padded to a multiple of 128 ---
    # Pick g minimizing the total number of 128-lane columns processed
    # (ties -> larger g = denser packing per grid step).
    g_hi = max(1, min(b, 512 // wp)) if wp <= 512 else 1
    best = None
    for g_c in range(1, g_hi + 1):
        cost = (-(-b // g_c)) * (-(-(g_c * wp) // 128))
        if best is None or cost < best[0] or (cost == best[0] and g_c > best[1]):
            best = (cost, g_c)
    g = best[1]
    bg = -(-b // g)
    bp = bg * g
    gwp_raw = g * wp
    gwp = (-(-gwp_raw // 128)) * 128          # lane width, multiple of 128

    if bp != b:
        xp_flat = jnp.pad(xp_flat, ((0, bp - b), (0, 0), (0, 0)))
    # TODO(synk): do the pack/unpack lane transposes in-kernel (pltpu.einshape)
    # to avoid two extra full-tensor HBM passes of XLA glue.
    xpk = (xp_flat.reshape(bg, g, hp, wp)
           .transpose(0, 2, 1, 3)
           .reshape(bg, hp, gwp_raw))
    if gwp != gwp_raw:
        xpk = jnp.pad(xpk, ((0, 0), (0, 0), (0, gwp - gwp_raw)))

    # --- grid-step sizing -----------------------------------------------------
    # Footprint model: 2x in + 2x out (double-buffered blocks) + live temporaries,
    # kept under ~24 MiB so it fits comfortably within the explicit 48 MiB scoped
    # VMEM limit on every generation (v7x physical VMEM is 64 MiB).
    itemsize = x.dtype.itemsize
    per_unit = hp * gwp * itemsize            # bytes per packed group (bt == 1)
    n_temps = 12 if (kh, kw) == (3, 3) else (kh * kw + 6)
    bt_cap = max(1, (24 << 20) // max(1, (4 + n_temps) * per_unit))
    # Keep >= 8 grid steps when possible so both v7x TensorCores get >= 4
    # pipelined steps each (grid == #cores leaves DMA fully exposed).
    bt_cap = min(bt_cap, max(1, bg // 8))
    bt = 1
    for d in range(2, bg + 1):
        if bg % d == 0 and d <= bt_cap:
            bt = d
    grid = (bg // bt,)

    # TODO(synk): for very large planes (hp * gwp blocks of tens of MiB), add an
    # H grid axis with a (kh-1)-row halo instead of full-plane blocks.
    if (kh, kw) == (3, 3):
        kernel = _median3x3_kernel
    else:
        kernel = functools.partial(_median_pool_kernel, kh=kh, kw=kw)

    out_packed = pl.pallas_call(
        kernel,
        out_shape=jax.ShapeDtypeStruct((bg, ho1, gwp), x.dtype),
        grid_spec=pltpu.PrefetchScalarGridSpec(
            num_scalar_prefetch=0,
            grid=grid,
            in_specs=[pl.BlockSpec((bt, hp, gwp), lambda i: (i, 0, 0))],
            out_specs=pl.BlockSpec((bt, ho1, gwp), lambda i: (i, 0, 0)),
        ),
        compiler_params=pltpu.CompilerParams(
            dimension_semantics=("parallel",),
            vmem_limit_bytes=48 * 1024 * 1024,
        ),
    )(xpk)

    # --- unpack lanes back to per-plane layout and crop garbage columns -----
    out_flat = (out_packed[:, :, :gwp_raw]
                .reshape(bg, ho1, g, wp)
                .transpose(0, 2, 1, 3)
                .reshape(bp, ho1, wp)[:b, :, :wo1])
    out = out_flat.reshape(n, c, ho1, wo1)

    # TODO(synk): when stride > 1, compute only the strided windows inside the
    # kernel (strided row / lane selection) instead of subsampling here.
    if sh > 1 or sw > 1:
        out = out[:, :, ::sh, ::sw]
    return out


# -----------------------------------------------------------------------------
# Pure-JAX reference (unfold + sort + lower median) for validation.
# -----------------------------------------------------------------------------

def _median_pool2d_ref(x, kernel_size=3, stride=1, padding=0, same=False):
    kh, kw = _pair(kernel_size)
    sh, sw = _pair(stride)
    n, c, h, w = x.shape
    if same:
        ph = max(kh - sh, 0) if h % sh == 0 else max(kh - h % sh, 0)
        pw = max(kw - sw, 0) if w % sw == 0 else max(kw - w % sw, 0)
        p_l, p_r, p_t, p_b = pw // 2, pw - pw // 2, ph // 2, ph - ph // 2
    else:
        p_l, p_r, p_t, p_b = _quadruple(padding)
    xp = jnp.pad(x, ((0, 0), (0, 0), (p_t, p_b), (p_l, p_r)), mode="reflect")
    hp, wp = xp.shape[2], xp.shape[3]
    ho = (hp - kh) // sh + 1
    wo = (wp - kw) // sw + 1
    windows = []
    for dy in range(kh):
        for dx in range(kw):
            windows.append(xp[:, :, dy:dy + sh * ho:sh, dx:dx + sw * wo:sw])
    stacked = jnp.stack(windows, axis=-1)
    srt = jnp.sort(stacked, axis=-1)
    return srt[..., (kh * kw - 1) // 2]


if __name__ == "__main__":
    key = jax.random.PRNGKey(0)
    x = jax.random.normal(key, (2, 4, 16, 16), dtype=jnp.float32)

    # Default module config: kernel_size=3, stride=1, padding=0, same=False
    out_default = median_pool2d(x, kernel_size=3, stride=1, padding=0, same=False)
    out_default = jax.block_until_ready(out_default)
    ref_default = _median_pool2d_ref(x, kernel_size=3, stride=1, padding=0, same=False)
    assert out_default.shape == (2, 4, 14, 14), out_default.shape
    assert jnp.allclose(out_default, ref_default), "mismatch (default config)"

    # 'same' padding config: output shape equals input shape
    out_same = median_pool2d(x, kernel_size=3, stride=1, same=True)
    out_same = jax.block_until_ready(out_same)
    ref_same = _median_pool2d_ref(x, kernel_size=3, stride=1, same=True)
    assert out_same.shape == (2, 4, 16, 16), out_same.shape
    assert jnp.allclose(out_same, ref_same), "mismatch (same-padding config)"

    print("KERNEL_OK")
</pallas_src>

<mosaic_0001>
module attributes {stable_mosaic.version = 11 : i64} {
  func.func @_median3x3_kernel(%arg0: i32, %arg1: memref<1x16x128xf32, #tpu.memory_space<vmem>>, %arg2: memref<1x14x128xf32, #tpu.memory_space<vmem>>) attributes {dimension_semantics = [#tpu.dimension_semantics<parallel>], iteration_bounds = array<i64: 1>, scalar_prefetch = 0 : i64, scratch_operands = 0 : i64, tpu.core_type = #tpu.core_type<tc>, window_params = [{transform_indices = @transform_0, window_bounds = array<i64: 1, 16, 128>}, {transform_indices = @transform_1, window_bounds = array<i64: 1, 14, 128>}]} {
    %c0 = arith.constant 0 : index
    %c0_0 = arith.constant 0 : index
    %c0_1 = arith.constant 0 : index
    %0 = vector.load %arg1[%c0, %c0_0, %c0_1] : memref<1x16x128xf32, #tpu.memory_space<vmem>>, vector<1x14x128xf32>
    %c0_2 = arith.constant 0 : index
    %c1 = arith.constant 1 : index
    %c0_3 = arith.constant 0 : index
    %1 = vector.load %arg1[%c0_2, %c1, %c0_3] : memref<1x16x128xf32, #tpu.memory_space<vmem>>, vector<1x14x128xf32>
    %c0_4 = arith.constant 0 : index
    %c2 = arith.constant 2 : index
    %c0_5 = arith.constant 0 : index
    %2 = vector.load %arg1[%c0_4, %c2, %c0_5] : memref<1x16x128xf32, #tpu.memory_space<vmem>>, vector<1x14x128xf32>
    %3 = arith.minimumf %0, %1 : vector<1x14x128xf32>
    %4 = arith.maximumf %0, %1 : vector<1x14x128xf32>
    %5 = arith.maximumf %4, %2 : vector<1x14x128xf32>
    %6 = arith.minimumf %4, %2 : vector<1x14x128xf32>
    %7 = arith.minimumf %3, %6 : vector<1x14x128xf32>
    %8 = arith.maximumf %3, %6 : vector<1x14x128xf32>
    %9 = vector.extract_strided_slice %7 {offsets = [0, 0, 1], sizes = [1, 14, 127], strides = [1, 1, 1]} : vector<1x14x128xf32> to vector<1x14x127xf32>
    %10 = vector.extract_strided_slice %7 {offsets = [0, 0, 0], sizes = [1, 14, 1], strides = [1, 1, 1]} : vector<1x14x128xf32> to vector<1x14x1xf32>
    %11 = tpu.concatenate %9, %10 in 2 : vector<1x14x127xf32>, vector<1x14x1xf32> -> vector<1x14x128xf32>
    %12 = vector.extract_strided_slice %7 {offsets = [0, 0, 2], sizes = [1, 14, 126], strides = [1, 1, 1]} : vector<1x14x128xf32> to vector<1x14x126xf32>
    %13 = vector.extract_strided_slice %7 {offsets = [0, 0, 0], sizes = [1, 14, 2], strides = [1, 1, 1]} : vector<1x14x128xf32> to vector<1x14x2xf32>
    %14 = tpu.concatenate %12, %13 in 2 : vector<1x14x126xf32>, vector<1x14x2xf32> -> vector<1x14x128xf32>
    %15 = vector.extract_strided_slice %8 {offsets = [0, 0, 1], sizes = [1, 14, 127], strides = [1, 1, 1]} : vector<1x14x128xf32> to vector<1x14x127xf32>
    %16 = vector.extract_strided_slice %8 {offsets = [0, 0, 0], sizes = [1, 14, 1], strides = [1, 1, 1]} : vector<1x14x128xf32> to vector<1x14x1xf32>
    %17 = tpu.concatenate %15, %16 in 2 : vector<1x14x127xf32>, vector<1x14x1xf32> -> vector<1x14x128xf32>
    %18 = vector.extract_strided_slice %8 {offsets = [0, 0, 2], sizes = [1, 14, 126], strides = [1, 1, 1]} : vector<1x14x128xf32> to vector<1x14x126xf32>
    %19 = vector.extract_strided_slice %8 {offsets = [0, 0, 0], sizes = [1, 14, 2], strides = [1, 1, 1]} : vector<1x14x128xf32> to vector<1x14x2xf32>
    %20 = tpu.concatenate %18, %19 in 2 : vector<1x14x126xf32>, vector<1x14x2xf32> -> vector<1x14x128xf32>
    %21 = vector.extract_strided_slice %5 {offsets = [0, 0, 1], sizes = [1, 14, 127], strides = [1, 1, 1]} : vector<1x14x128xf32> to vector<1x14x127xf32>
    %22 = vector.extract_strided_slice %5 {offsets = [0, 0, 0], sizes = [1, 14, 1], strides = [1, 1, 1]} : vector<1x14x128xf32> to vector<1x14x1xf32>
    %23 = tpu.concatenate %21, %22 in 2 : vector<1x14x127xf32>, vector<1x14x1xf32> -> vector<1x14x128xf32>
    %24 = vector.extract_strided_slice %5 {offsets = [0, 0, 2], sizes = [1, 14, 126], strides = [1, 1, 1]} : vector<1x14x128xf32> to vector<1x14x126xf32>
    %25 = vector.extract_strided_slice %5 {offsets = [0, 0, 0], sizes = [1, 14, 2], strides = [1, 1, 1]} : vector<1x14x128xf32> to vector<1x14x2xf32>
    %26 = tpu.concatenate %24, %25 in 2 : vector<1x14x126xf32>, vector<1x14x2xf32> -> vector<1x14x128xf32>
    %27 = arith.maximumf %7, %11 : vector<1x14x128xf32>
    %28 = arith.maximumf %27, %14 : vector<1x14x128xf32>
    %29 = arith.minimumf %17, %20 : vector<1x14x128xf32>
    %30 = arith.maximumf %8, %29 : vector<1x14x128xf32>
    %31 = arith.maximumf %17, %20 : vector<1x14x128xf32>
    %32 = arith.minimumf %30, %31 : vector<1x14x128xf32>
    %33 = arith.minimumf %5, %23 : vector<1x14x128xf32>
    %34 = arith.minimumf %33, %26 : vector<1x14x128xf32>
    %35 = arith.minimumf %32, %34 : vector<1x14x128xf32>
    %36 = arith.maximumf %28, %35 : vector<1x14x128xf32>
    %37 = arith.maximumf %32, %34 : vector<1x14x128xf32>
    %38 = arith.minimumf %36, %37 : vector<1x14x128xf32>
    %c0_6 = arith.constant 0 : index
    %c0_7 = arith.constant 0 : index
    %c0_8 = arith.constant 0 : index
    %39 = vector.load %arg2[%c0_6, %c0_7, %c0_8] : memref<1x14x128xf32, #tpu.memory_space<vmem>>, vector<1x14x128xf32>
    tpu.vector_store %arg2[%c0_6, %c0_7, %c0_8], %38 {strides = array<i32>} : memref<1x14x128xf32, #tpu.memory_space<vmem>>, vector<1x14x128xf32>,
    return
  }
  func.func @transform_0(%arg0: i32) -> (i32, i32, i32) {
    %c0_i32 = arith.constant 0 : i32
    %c0_i32_0 = arith.constant 0 : i32
    %c0_i32_1 = arith.constant 0 : i32
    return %arg0, %c0_i32, %c0_i32_0 : i32, i32, i32
  }
  func.func @transform_1(%arg0: i32) -> (i32, i32, i32) {
    %c0_i32 = arith.constant 0 : i32
    %c0_i32_0 = arith.constant 0 : i32
    %c0_i32_1 = arith.constant 0 : i32
    return %arg0, %c0_i32, %c0_i32_0 : i32, i32, i32
  }
}

</mosaic_0001>

<bundles_post_ra>
// kernel: tpu_custom_call.1
= control target key start
LH: loop header
LB: loop body
LE: loop exit
PB: predicated region body
PF: predicated region fallthrough
CT: control target
= control target key end

     0   :  { %6 = vsyncpa [#allocation3], 0  ;;  %s142_s6 = smov [#allocation2]   ;;  %s175_s0 = inlined_call_operand.hbm [shape: f32[1,16,128], index: 0, kind: input, shape index: {}]   ;;  %s176_s1 = inlined_call_operand.vmem [shape: f32[1,14,128], index: 1, kind: output, shape index: {}]  }
   0x1   :  { %s12_s7 = sshll.u32 %s142_s6, 4  ;;  %s118_s10 = scalar_lea.hbm %s175_s0, 256  ;;  %s13_s7 = int_to_ptr.vmem [resolvable:$true] %s12_s7 }
   0x2   :  { %p119_p0 = scmp.ne.s32.totalorder %s175_s0, %s118_s10  ;;  %p122_p1 = scmp.lt.u32.totalorder %s118_s10, %s175_s0 }
   0x4   :  { %p124_p2 = pnand %p122_p1, %p119_p0 }
   0x6   :  { %127 = shalt.err (!%p124_p2)
}
   0x7   :  { %s128_s15 = scalar_lea.vmem %s13_s7, 256  ;;  %p133_p4 = scmp.lt.s32.totalorder %s13_s7, %s13_s7 }
   0x8   :  { %p129_p3 = scmp.ne.s32.totalorder %s13_s7, %s128_s15  ;;  %p134_p5 = scmp.lt.s32.totalorder %s128_s15, %s128_s15 }
   0xa   :  { %p135_p6 = por %p134_p5, %p133_p4 }
   0xc   :  { %p136_p7 = pnand %p135_p6, %p129_p3 }
   0xe   :  { %139 = shalt.err (!%p136_p7)
}
   0xf   :  { %s143_s16 = smov 128   ;;  %s144_s17 = smov 8  }
  0x10   :  { %18 = dma.hbm_to_vmem [thread:$0]  %s175_s0, 256, %s13_s7, [#allocation3], %s143_s16, %s143_s16, %s144_s17  }
  0x11   :  { %140 = dma.done.wait [#allocation3], 256  }
  0x12   :  { %141 = vsyncadd [#allocation3], 4294967040  ;;  %v23_v0 = vld [vmem:[#allocation2 + $0x8] sm:$0x3f]  ;;  %v22_v4 = vld [vmem:[#allocation2] sm:$0xff]  ;;  %s145_s20 = smov 127  }
  0x13   :  { %v25_v1 = vld [vmem:[#allocation2 + $0x9] sm:$0x3f]  ;;  %v24_v5 = vld [vmem:[#allocation2 + $0x1] sm:$0xff]  ;;  %s146_s0 = smov 126  }
  0x14   :  { %v27_v2 = vld [vmem:[#allocation2 + $0xa] sm:$0x3f]  ;;  %v31_v3 = vmax.f32 %v23_v0, %v25_v1  ;;  %v26_v6 = vld [vmem:[#allocation2 + $0x2] sm:$0xff]  ;;  %v30_v7 = vmax.f32 %v22_v4, %v24_v5  ;;  %v28_v8 = vmin.f32 %v22_v4, %v24_v5  ;;  %v29_v12 = vmin.f32 %v23_v0, %v25_v1 }
  0x16   :  { %v33_v9 = vmax.f32 %v31_v3, %v27_v2  ;;  %v32_v10 = vmax.f32 %v30_v7, %v26_v6  ;;  %v34_v11 = vmin.f32 %v30_v7, %v26_v6  ;;  %v35_v13 = vmin.f32 %v31_v3, %v27_v2 }
  0x18   :  { %72 = vrot.lane.b32.xlu1 %v33_v9, %s145_s20  ;;  %70 = vrot.lane.b32.xlu0 %v32_v10, %s145_s20  ;;  %v38_v14 = vmax.f32 %v28_v8, %v34_v11  ;;  %v39_v15 = vmax.f32 %v29_v12, %v35_v13  ;;  %v37_v16 = vmin.f32 %v29_v12, %v35_v13 }
  0x19   :  { %v36_v17 = vmin.f32 %v28_v8, %v34_v11 }
  0x1c   :  { %62 = vrot.lane.b32.xlu1 %v38_v14, %s146_s0  ;;  %56 = vrot.lane.b32.xlu0 %v38_v14, %s145_s20 }
  0x20   :  { %64 = vrot.lane.b32.xlu1 %v39_v15, %s146_s0  ;;  %58 = vrot.lane.b32.xlu0 %v39_v15, %s145_s20 }
  0x24   :  { %44 = vrot.lane.b32.xlu1 %v37_v16, %s145_s20  ;;  %42 = vrot.lane.b32.xlu0 %v36_v17, %s145_s20 }
  0x28   :  { %78 = vrot.lane.b32.xlu1 %v33_v9, %s146_s0  ;;  %76 = vrot.lane.b32.xlu0 %v32_v10, %s146_s0 }
  0x2c   :  { %50 = vrot.lane.b32.xlu1 %v37_v16, %s146_s0  ;;  %48 = vrot.lane.b32.xlu0 %v36_v17, %s146_s0 }
  0x8a   :  { %v73_v18 = vpop.permute.xlu1 %72  ;;  %v71_v19 = vpop.permute.xlu0 %70 }
  0x8b   :  { %v95_v28 = vmin.f32 %v33_v9, %v73_v18  ;;  %v94_v30 = vmin.f32 %v32_v10, %v71_v19 }
  0x8e   :  { %v63_v20 = vpop.permute.xlu1 %62  ;;  %v57_v21 = vpop.permute.xlu0 %56 }
  0x8f   :  { %v86_v25 = vmin.f32 %v57_v21, %v63_v20  ;;  %v90_v36 = vmax.f32 %v57_v21, %v63_v20 }
  0x91   :  { %v88_v31 = vmax.f32 %v38_v14, %v86_v25 }
  0x92   :  { %v65_v22 = vpop.permute.xlu1 %64  ;;  %v59_v23 = vpop.permute.xlu0 %58 }
  0x93   :  { %v87_v24 = vmin.f32 %v59_v23, %v65_v22  ;;  %v91_v33 = vmax.f32 %v59_v23, %v65_v22  ;;  %v92_v40 = vmin.f32 %v88_v31, %v90_v36 }
  0x95   :  { %v89_v29 = vmax.f32 %v39_v15, %v87_v24 }
  0x96   :  { %v45_v26 = vpop.permute.xlu1 %44  ;;  %v43_v27 = vpop.permute.xlu0 %42 }
  0x97   :  { %v93_v38 = vmin.f32 %v89_v29, %v91_v33  ;;  %v83_v39 = vmax.f32 %v37_v16, %v45_v26  ;;  %v82_v41 = vmax.f32 %v36_v17, %v43_v27 }
  0x9a   :  { %v79_v32 = vpop.permute.xlu1 %78  ;;  %v77_v35 = vpop.permute.xlu0 %76 }
  0x9b   :  { %v97_v34 = vmin.f32 %v95_v28, %v79_v32  ;;  %v96_v37 = vmin.f32 %v94_v30, %v77_v35 }
  0x9d   :  { %v99_v43 = vmin.f32 %v93_v38, %v97_v34  ;;  %v98_v46 = vmin.f32 %v92_v40, %v96_v37  ;;  %v103_v48 = vmax.f32 %v93_v38, %v97_v34  ;;  %v102_v50 = vmax.f32 %v92_v40, %v96_v37 }
  0x9e   :  { %v51_v42 = vpop.permute.xlu1 %50  ;;  %v49_v45 = vpop.permute.xlu0 %48 }
  0x9f   :  { %v85_v44 = vmax.f32 %v83_v39, %v51_v42  ;;  %v84_v47 = vmax.f32 %v82_v41, %v49_v45 }
  0xa1   :  { %v101_v49 = vmax.f32 %v85_v44, %v99_v43  ;;  %v100_v51 = vmax.f32 %v84_v47, %v98_v46 }
  0xa3   :  { %v105_v52 = vmin.f32 %v101_v49, %v103_v48  ;;  %v104_v53 = vmin.f32 %v100_v51, %v102_v50 }
  0xa5   :  { %107 = vst [vmem:[%s176_s1 + $0x8] sm:$0x3f] %v105_v52  ;;  %106 = vst [vmem:[%s176_s1] sm:$0xff] %v104_v53 }
  0xa6   :  { %112 = vsyncpa [#allocation3], 1 }

</bundles_post_ra>
